<compile_context>
chip_gen: v7x
topology: tpu7x:2x2x1
jax: 0.10.0
libtpu: 0.0.40
codegen_flags: <defaults>
</compile_context>

<pallas_src>
import functools
import math

import jax
import jax.numpy as jnp
from jax.experimental import pallas as pl
from jax.experimental.pallas import tpu as pltpu

IN_DIM = 28 * 28      # 784
OUT_DIM = 10          # real number of classes
OUT_PAD = 128         # lane-dense padded class dim
_NEG_BIG = -1e30      # pad-class bias value (exp underflows to exactly 0 in f32)


def netlin_kernel(x_ref, w_ref, b_ref, out_ref):
    # x_ref: (TB, 784) bf16, w_ref: (784, 128) bf16, b_ref: (1, 128) f32,
    # out_ref: (TB, 128) bf16
    # Linear layer: native bf16 x bf16 MXU matmul, f32 accumulation.  The pad
    # classes get logit -1e30 via the baked bias, so no in-kernel masking.
    logits = jnp.dot(x_ref[...], w_ref[...],
                     preferred_element_type=jnp.float32) + b_ref[...]

    # Numerically stable log-softmax over the class axis (dim=1), all in f32.
    m = jnp.max(logits, axis=-1, keepdims=True)
    shifted = logits - m
    lse = jnp.log(jnp.sum(jnp.exp(shifted), axis=-1, keepdims=True))
    out_ref[...] = (shifted - lse).astype(out_ref.dtype)


def _round_up(n, m):
    return ((n + m - 1) // m) * m


def init_params(key):
    """nn.Linear-style init: U(-1/sqrt(fan_in), 1/sqrt(fan_in)).
    Weight stored transposed as (in, out) so the kernel computes y = x @ W + b."""
    k_w, k_b = jax.random.split(key)
    bound = 1.0 / math.sqrt(IN_DIM)
    w = jax.random.uniform(k_w, (IN_DIM, OUT_DIM), jnp.float32, -bound, bound)
    b = jax.random.uniform(k_b, (OUT_DIM,), jnp.float32, -bound, bound)
    return w, b


def pad_params(w, b):
    """Pad (784, 10) / (10,) params to lane-dense (784, 128) / (1, 128).

    * weight cast to bf16 once (halves weight VMEM/DMA, native MXU path);
    * pad-class mask baked into the f32 bias as -1e30 so the kernel needs no
      iota/where per tile.
    Call once at param-prep time, not per forward call."""
    w_p = (jnp.zeros((IN_DIM, OUT_PAD), jnp.bfloat16)
           .at[:, :OUT_DIM].set(w.astype(jnp.bfloat16)))
    b_p = (jnp.full((1, OUT_PAD), _NEG_BIG, jnp.float32)
           .at[0, :OUT_DIM].set(b.astype(jnp.float32)))
    return w_p, b_p


@functools.partial(jax.jit, static_argnames=("tb",))
def netlin_forward(x_nchw, w_pad, b_pad, *, tb=4096):
    """x_nchw: (B, 1, 28, 28) (any float dtype). Returns (B, 10) log-probs (bf16).

    VMEM budget at tb=4096 (double-buffered): bf16 x tile ~14.7 MiB, bf16 out
    tile ~2 MiB, resident bf16 weights ~0.4 MiB -> ~17 MiB, covered by the
    explicit 48 MiB vmem limit on every generation (v5e default is only 16 MiB).
    """
    B = x_nchw.shape[0]
    x_flat = x_nchw.reshape(B, IN_DIM).astype(jnp.bfloat16)  # == torch x.view(B, -1)

    # Adaptive batch tile: multiple of 16 (bf16 sublane packing); capped so a
    # large batch yields >= ~8 tiles (keeps both v7x TensorCores busy) and a
    # tiny batch doesn't over-allocate.
    tb = max(16, min(tb, _round_up(pl.cdiv(B, 8), 16)))
    tb = _round_up(tb, 16)
    grid = (pl.cdiv(B, tb),)  # ragged last block instead of jnp.pad-ing x

    bytes_accessed = (B * IN_DIM * 2            # bf16 x read
                      + B * OUT_PAD * 2         # bf16 out write
                      + IN_DIM * OUT_PAD * 2    # resident bf16 weights
                      + OUT_PAD * 4)            # f32 bias

    out = pl.pallas_call(
        netlin_kernel,
        out_shape=jax.ShapeDtypeStruct((B, OUT_PAD), jnp.bfloat16),
        grid_spec=pltpu.PrefetchScalarGridSpec(
            num_scalar_prefetch=0,
            grid=grid,
            in_specs=[
                pl.BlockSpec((tb, IN_DIM), lambda i: (i, 0)),       # streamed x tile
                pl.BlockSpec((IN_DIM, OUT_PAD), lambda i: (0, 0)),  # resident weights
                pl.BlockSpec((1, OUT_PAD), lambda i: (0, 0)),       # resident bias
            ],
            out_specs=pl.BlockSpec((tb, OUT_PAD), lambda i: (i, 0)),
        ),
        compiler_params=pltpu.CompilerParams(
            dimension_semantics=("parallel",),       # shard batch tiles across TCs
            vmem_limit_bytes=48 * 1024 * 1024,       # covers tb=4096 on v5e too
        ),
        cost_estimate=pl.CostEstimate(
            flops=2 * B * IN_DIM * OUT_PAD,
            transcendentals=B * OUT_PAD,
            bytes_accessed=bytes_accessed,
        ),
    )(x_flat, w_pad, b_pad)

    # Module semantics: (B, 10) log-probs.  Perf-sensitive consumers (argmax /
    # NLL gather) should instead consume the padded (B, 128) slab and index
    # columns 0..9 lazily to avoid this slice materialization.
    return out[:, :OUT_DIM]


if __name__ == "__main__":
    key = jax.random.PRNGKey(0)
    k_x, k_p = jax.random.split(key)

    B = 2
    # KMNIST-like NCHW input; bf16 at the producer halves the dominant HBM read.
    x = jax.random.normal(k_x, (B, 1, 28, 28), jnp.float32).astype(jnp.bfloat16)
    w, b = init_params(k_p)
    w_pad, b_pad = pad_params(w, b)     # once, at param-prep time

    out = netlin_forward(x, w_pad, b_pad)
    out = jax.block_until_ready(out)

    # Plain-JAX reference using the same bf16 input / bf16-quantized weights,
    # f32 math.  Tolerance loosened because the kernel output is stored bf16.
    xf = x.reshape(B, -1).astype(jnp.float32)
    wf = w.astype(jnp.bfloat16).astype(jnp.float32)
    ref = jax.nn.log_softmax(xf @ wf + b, axis=-1)

    assert out.shape == (B, OUT_DIM)
    out_f32 = out.astype(jnp.float32)
    assert not bool(jnp.any(jnp.isnan(out_f32))), "NaNs in kernel output"
    assert jnp.allclose(out_f32, ref, atol=5e-2, rtol=2e-2), "mismatch vs reference"

    print("KERNEL_OK")
</pallas_src>

<mosaic_0001>
module attributes {stable_mosaic.version = 11 : i64} {
  func.func @netlin_kernel(%arg0: i32, %arg1: memref<16x784xbf16, #tpu.memory_space<vmem>>, %arg2: memref<784x128xbf16, #tpu.memory_space<vmem>>, %arg3: memref<1x128xf32, #tpu.memory_space<vmem>>, %arg4: memref<16x128xbf16, #tpu.memory_space<vmem>>) attributes {dimension_semantics = [#tpu.dimension_semantics<parallel>], iteration_bounds = array<i64: 1>, scalar_prefetch = 0 : i64, scratch_operands = 0 : i64, tpu.core_type = #tpu.core_type<tc>, window_params = [{transform_indices = @transform_0, window_bounds = array<i64: 16, 784>}, {pipeline_mode = #tpu.pipeline_mode<synchronous>, transform_indices = @transform_1, window_bounds = array<i64: 784, 128>}, {pipeline_mode = #tpu.pipeline_mode<synchronous>, transform_indices = @transform_2, window_bounds = array<i64: 1, 128>}, {transform_indices = @transform_3, window_bounds = array<i64: 16, 128>}]} {
    %c0 = arith.constant 0 : index
    %c0_0 = arith.constant 0 : index
    %0 = vector.load %arg1[%c0, %c0_0] : memref<16x784xbf16, #tpu.memory_space<vmem>>, vector<16x784xbf16>
    %c0_1 = arith.constant 0 : index
    %c0_2 = arith.constant 0 : index
    %1 = vector.load %arg2[%c0_1, %c0_2] : memref<784x128xbf16, #tpu.memory_space<vmem>>, vector<784x128xbf16>
    %cst = arith.constant dense<0.000000e+00> : vector<16x128xf32>
    %2 = tpu.matmul %0, %1, %cst {dimension_numbers = #tpu.dot_dimension_numbers<[1], [0], [0], [1], [0, 0, 1, 1], [], []>} : vector<16x784xbf16>, vector<784x128xbf16>, vector<16x128xf32> -> vector<16x128xf32>
    %c0_3 = arith.constant 0 : index
    %c0_4 = arith.constant 0 : index
    %3 = vector.load %arg3[%c0_3, %c0_4] : memref<1x128xf32, #tpu.memory_space<vmem>>, vector<1x128xf32>
    %4 = vector.broadcast %3 : vector<1x128xf32> to vector<16x128xf32>
    %5 = arith.addf %2, %4 : vector<16x128xf32>
    %cst_5 = arith.constant dense<0xFF800000> : vector<16xf32>
    %6 = vector.multi_reduction <maximumf>, %5, %cst_5 [1] : vector<16x128xf32> to vector<16xf32>
    %7 = vector.shape_cast %6 : vector<16xf32> to vector<16x1xf32>
    %8 = vector.broadcast %7 : vector<16x1xf32> to vector<16x128xf32>
    %9 = arith.subf %5, %8 : vector<16x128xf32>
    %10 = math.exp %9 : vector<16x128xf32>
    %cst_6 = arith.constant dense<0.000000e+00> : vector<16xf32>
    %11 = vector.multi_reduction <add>, %10, %cst_6 [1] : vector<16x128xf32> to vector<16xf32>
    %12 = vector.shape_cast %11 : vector<16xf32> to vector<16x1xf32>
    %13 = math.log %12 : vector<16x1xf32>
    %14 = vector.broadcast %13 : vector<16x1xf32> to vector<16x128xf32>
    %15 = arith.subf %9, %14 : vector<16x128xf32>
    %16 = arith.truncf %15 : vector<16x128xf32> to vector<16x128xbf16>
    %c0_7 = arith.constant 0 : index
    %c0_8 = arith.constant 0 : index
    %17 = vector.load %arg4[%c0_7, %c0_8] : memref<16x128xbf16, #tpu.memory_space<vmem>>, vector<16x128xbf16>
    tpu.vector_store %arg4[%c0_7, %c0_8], %16 {strides = array<i32>} : memref<16x128xbf16, #tpu.memory_space<vmem>>, vector<16x128xbf16>,
    return
  }
  func.func @transform_0(%arg0: i32) -> (i32, i32) {
    %c0_i32 = arith.constant 0 : i32
    %c0_i32_0 = arith.constant 0 : i32
    return %arg0, %c0_i32 : i32, i32
  }
  func.func @transform_1(%arg0: i32) -> (i32, i32) {
    %c0_i32 = arith.constant 0 : i32
    %c0_i32_0 = arith.constant 0 : i32
    %c0_i32_1 = arith.constant 0 : i32
    return %c0_i32, %c0_i32_0 : i32, i32
  }
  func.func @transform_2(%arg0: i32) -> (i32, i32) {
    %c0_i32 = arith.constant 0 : i32
    %c0_i32_0 = arith.constant 0 : i32
    %c0_i32_1 = arith.constant 0 : i32
    return %c0_i32, %c0_i32_0 : i32, i32
  }
  func.func @transform_3(%arg0: i32) -> (i32, i32) {
    %c0_i32 = arith.constant 0 : i32
    %c0_i32_0 = arith.constant 0 : i32
    return %arg0, %c0_i32 : i32, i32
  }
}

</mosaic_0001>

<bundles_post_ra>
// kernel: netlin_forward.1
= control target key start
LH: loop header
LB: loop body
LE: loop exit
PB: predicated region body
PF: predicated region fallthrough
CT: control target
= control target key end

     0   :  { %8 = vsyncpa [#allocation3], 0  ;;  %s1218_s0 = inlined_call_operand.vmem [shape: bf16[2,784], index: 0, kind: input, shape index: {}]   ;;  %s1219_s1 = inlined_call_operand.hbm [shape: bf16[784,128], index: 1, kind: input, shape index: {}]   ;;  %s1220_s2 = inlined_call_operand.vmem [shape: f32[1,128], index: 2, kind: input, shape index: {}]   ;;  %s1221_s3 = inlined_call_operand.hbm [shape: bf16[2,128], index: 3, kind: output, shape index: {}]  }
   0x1   :  { %9 = vsyncpa [#allocation4], 0  ;;  %s1114_s12 = smov [#allocation2]   ;;  %s1066_s16 = scalar_lea.hbm %s1219_s1, 6272 }
   0x2   :  { %s17_s13 = sshll.u32 %s1114_s12, 4  ;;  %p1067_p0 = scmp.ne.s32.totalorder %s1219_s1, %s1066_s16  ;;  %s18_s13 = int_to_ptr.vmem [resolvable:$true] %s17_s13 }
   0x3   :  { %p1070_p1 = scmp.lt.u32.totalorder %s1066_s16, %s1219_s1 }
   0x5   :  { %p1072_p2 = pnand %p1070_p1, %p1067_p0 }
   0x7   :  { %1075 = shalt.err (!%p1072_p2)
}
   0x8   :  { %s1076_s21 = scalar_lea.vmem %s18_s13, 6272  ;;  %p1081_p4 = scmp.lt.s32.totalorder %s18_s13, %s18_s13 }
   0x9   :  { %p1077_p3 = scmp.ne.s32.totalorder %s18_s13, %s1076_s21  ;;  %p1082_p5 = scmp.lt.s32.totalorder %s1076_s21, %s1076_s21 }
   0xb   :  { %p1083_p6 = por %p1082_p5, %p1081_p4 }
   0xd   :  { %p1084_p7 = pnand %p1083_p6, %p1077_p3 }
   0xf   :  { %1087 = shalt.err (!%p1084_p7)
}
  0x10   :  { %s1115_s22 = smov 64   ;;  %s1116_s23 = smov 4  }
  0x11   :  { %23 = dma.hbm_to_vmem [thread:$0]  %s1219_s1, 6272, %s18_s13, [#allocation3], %s1115_s22, %s1115_s22, %s1116_s23  }
  0x12   :  { %1110 = dma.done.wait [#allocation3], 6272  }
  0x13   :  { %1111 = vsyncadd [#allocation3], 4294961024  ;;  %v997_v0 = vld [vmem:[#allocation2 + $0x40] sm:$0xff]   ;;  %v1001_v4 = vld [vmem:[#allocation2 + $0x48] sm:$0xff]   ;;  %v1117_v24 = vmov 1966171168   ;;  %v162_v26 = vlaneseq }
  0x14   :  { %v998_v1 = vld [vmem:[#allocation2] sm:$0xff]   ;;  %914 = vmatprep.subr.bf16.mxu0 %v997_v0  ;;  %v1002_v5 = vld [vmem:[#allocation2 + $0x8] sm:$0xff]   ;;  %v1005_v8 = vld [vmem:[#allocation2 + $0x50] sm:$0xff]   ;;  %v160_v25 = vunpack.c.l.s4 %v1117_v24  ;;  %v1118_v51 = vmov 0.0   ;;  %vm1119_vm0 = vmmov 0   ;;  %vm586_vm1 = vcmask 130048  }
  0x15   :  { %v999_v2 = vld [vmem:[#allocation2 + $0xc0] sm:$0xff]   ;;  %915 = vmatpush3.bf16.msra.mxu0 %v998_v1  ;;  %v1003_v6 = vld [vmem:[#allocation2 + $0xc8] sm:$0xff]   ;;  %v1006_v9 = vld [vmem:[#allocation2 + $0x10] sm:$0xff]   ;;  %v163_v32 = vshrl.u32 %v162_v26, 7 }
  0x16   :  { %v1000_v3 = vld [vmem:[#allocation2 + $0x80] sm:$0xff]   ;;  %936 = vmatprep.subr.bf16.mxu1 %v999_v2  ;;  %916 = vmatprep.subr.bf16.mxu0 %v1001_v4  ;;  %v1004_v7 = vld [vmem:[#allocation2 + $0x88] sm:$0xff]   ;;  %v1007_v10 = vld [vmem:[#allocation2 + $0xd0] sm:$0xff]   ;;  %v161_v31 = vunpack.c.0.s8 %v160_v25 }
  0x17   :  { %937 = vmatpush3.bf16.msra.mxu1 %v1000_v3  ;;  %v1008_v11 = vld [vmem:[#allocation2 + $0x90] sm:$0xff]   ;;  %v1009_v12 = vld [vmem:[#allocation2 + $0x58] sm:$0xff]   ;;  %v1013_v16 = vld [vmem:[#allocation2 + $0x60] sm:$0xff]  }
  0x18   :  { %938 = vmatprep.subr.bf16.mxu1 %v1003_v6  ;;  %v1010_v13 = vld [vmem:[#allocation2 + $0x18] sm:$0xff]   ;;  %v1014_v17 = vld [vmem:[#allocation2 + $0x20] sm:$0xff]   ;;  %v1017_v20 = vld [vmem:[#allocation2 + $0x68] sm:$0xff]   ;;  %v1155_v36 = vsub.s32 %v161_v31, %v163_v32 }
  0x19   :  { %917 = vmatpush3.bf16.msra.mxu0 %v1002_v5  ;;  %v1011_v14 = vld [vmem:[#allocation2 + $0xd8] sm:$0xff]   ;;  %v1015_v18 = vld [vmem:[#allocation2 + $0xe0] sm:$0xff]   ;;  %v1018_v21 = vld [vmem:[#allocation2 + $0x28] sm:$0xff]  }
  0x1a   :  { %918 = vmatprep.subr.bf16.mxu0 %v1005_v8  ;;  %v1012_v15 = vld [vmem:[#allocation2 + $0x98] sm:$0xff]   ;;  %v1016_v19 = vld [vmem:[#allocation2 + $0xa0] sm:$0xff]   ;;  %v1019_v22 = vld [vmem:[#allocation2 + $0xe8] sm:$0xff]  }
  0x1b   :  { %939 = vmatpush3.bf16.msra.mxu1 %v1004_v7  ;;  %v1020_v23 = vld [vmem:[#allocation2 + $0xa8] sm:$0xff]   ;;  %v1021_v27 = vld [vmem:[#allocation2 + $0x70] sm:$0xff]   ;;  %v1025_v33 = vld [vmem:[#allocation2 + $0x78] sm:$0xff]  }
  0x1c   :  { %940 = vmatprep.subr.bf16.mxu1 %v1007_v10  ;;  %v1022_v28 = vld [vmem:[#allocation2 + $0x30] sm:$0xff]   ;;  %v1026_v34 = vld [vmem:[#allocation2 + $0x38] sm:$0xff]   ;;  %v1028_v37 = vld [vmem:[%s1218_s0] ss:$7 sps:$4 sm:$0xff]  }
  0x1d   :  { %919 = vmatpush3.bf16.msra.mxu0 %v1006_v9  ;;  %v1023_v29 = vld [vmem:[#allocation2 + $0xf0] sm:$0xff]   ;;  %v1027_v35 = vld [vmem:[#allocation2 + $0xf8] sm:$0xff]   ;;  %v1030_v38 = vld [vmem:[%s1218_s0 + $0x4] ss:$7 sps:$4 sm:$0x77]   ;;  %v165_v43 = vrot.slane %v1028_v37, %v1155_v36 }
  0x1e   :  { %920 = vmatprep.subr.bf16.mxu0 %v1009_v12  ;;  %v1024_v30 = vld [vmem:[#allocation2 + $0xb0] sm:$0xff]   ;;  %v1040_v40 = vld [vmem:[#allocation2 + $0xb8] sm:$0xff]   ;;  %v1041_v44 = vld [vmem:[#allocation2 + $0x140] sm:$0xff]   ;;  %v172_v48 = vrot.slane %v1030_v38, %v1155_v36 }
  0x1f   :  { %941 = vmatpush3.bf16.msra.mxu1 %v1008_v11  ;;  %v1031_v39 = vld [vmem:[%s1218_s0 + $0xe] ss:$7 sps:$4 sm:$0xff]   ;;  %v1033_v41 = vld [vmem:[%s1218_s0 + $0x12] ss:$7 sps:$4 sm:$0x77]   ;;  %v1042_v7 = vld [vmem:[#allocation2 + $0x100] sm:$0xff]  }
  0x20   :  { %942 = vmatprep.subr.bf16.mxu1 %v1011_v14  ;;  %v1034_v42 = vld [vmem:[%s1218_s0 + $0x1c] ss:$7 sps:$4 sm:$0xff]   ;;  %v1036_v45 = vld [vmem:[%s1218_s0 + $0x20] ss:$7 sps:$4 sm:$0x77]   ;;  %v179_v47 = vrot.slane %v1031_v39, %v1155_v36  ;;  %v186_v52 = vrot.slane %v1033_v41, %v1155_v36  ;;  %v1045_v12 = vld [vmem:[#allocation2 + $0x150] sm:$0xff]  }
  0x21   :  { %921 = vmatpush3.bf16.msra.mxu0 %v1010_v13  ;;  %v1037_v46 = vld [vmem:[%s1218_s0 + $0x2a] ss:$7 sps:$4 sm:$0xff]   ;;  %v1039_v49 = vld [vmem:[%s1218_s0 + $0x2e] ss:$7 sps:$4 sm:$0x77]   ;;  %v193_v50 = vrot.slane %v1034_v42, %v1155_v36  ;;  %v200_v56 = vrot.slane %v1036_v45, %v1155_v36 }
  0x22   :  { %922 = vmatprep.subr.bf16.mxu0 %v1013_v16  ;;  %v207_v53 = vrot.slane %v1037_v46, %v1155_v36  ;;  %v216_v54 = vcombine.high %v165_v43, %v179_v47  ;;  %v215_v55 = vcombine.low %v165_v43, %v179_v47  ;;  %v214_v57 = vrot.slane %v1039_v49, %v1155_v36  ;;  %v1043_v9 = vld [vmem:[#allocation2 + $0x148] sm:$0xff]   ;;  %v1047_v16 = vld [vmem:[#allocation2 + $0x158] sm:$0xff]   ;;  %v1053_v26 = vld [vmem:[#allocation2 + $0x170] sm:$0xff]  }
  0x23   :  { %943 = vmatpush3.bf16.msra.mxu1 %v1012_v15  ;;  %v218_v58 = vcombine.high %v172_v48, %v186_v52  ;;  %v1044_v11 = vld [vmem:[#allocation2 + $0x108] sm:$0xff]   ;;  %v217_v13 = vcombine.low %v172_v48, %v186_v52  ;;  %v1046_v15 = vld [vmem:[#allocation2 + $0x110] sm:$0xff]  }
  0x24   :  { %944 = vmatprep.subr.bf16.mxu1 %v1015_v18  ;;  %v220_v59 = vcombine.high %v193_v50, %v207_v53  ;;  %v243_v60 = vrot.slane %v216_v54, %v1155_v36  ;;  %v219_v61 = vcombine.low %v193_v50, %v207_v53  ;;  %v229_v62 = vrot.slane %v215_v55, %v1155_v36  ;;  %v1051_v24 = vld [vmem:[#allocation2 + $0x168] sm:$0xff]  }
  0x25   :  { %923 = vmatpush3.bf16.msra.mxu0 %v1014_v17  ;;  %v222_v63 = vcombine.high %v200_v56, %v214_v57  ;;  %v250_v0 = vrot.slane %v218_v58, %v1155_v36  ;;  %v221_v14 = vcombine.low %v200_v56, %v214_v57  ;;  %v236_v17 = vrot.slane %v217_v13, %v1155_v36  ;;  %v1052_v25 = vld [vmem:[#allocation2 + $0x128] sm:$0xff]  }
  0x26   :  { %924 = vmatprep.subr.bf16.mxu0 %v1017_v20  ;;  %v271_v1 = vrot.slane %v220_v59, %v1155_v36  ;;  %v257_v2 = vrot.slane %v219_v61, %v1155_v36 }
  0x27   :  { %945 = vmatpush3.bf16.msra.mxu1 %v1016_v19  ;;  %v278_v3 = vrot.slane %v222_v63, %v1155_v36  ;;  %v264_v18 = vrot.slane %v221_v14, %v1155_v36  ;;  %v1057_v19 = vld [vmem:[#allocation2 + $0x180] sm:$0xff]  }
  0x28   :  { %946 = vmatprep.subr.bf16.mxu1 %v1019_v22  ;;  %v283_v4 = vcombine.low %v243_v60, %v271_v1  ;;  %v279_v5 = vcombine.low %v229_v62, %v257_v2  ;;  %v284_v6 = vcombine.high %v243_v60, %v271_v1  ;;  %v280_v8 = vcombine.high %v229_v62, %v257_v2  ;;  %v1049_v22 = vld [vmem:[#allocation2 + $0x160] sm:$0xff]  }
  0x29   :  { %925 = vmatpush3.bf16.msra.mxu0 %v1018_v21  ;;  %v285_v10 = vcombine.low %v250_v0, %v278_v3  ;;  %v282_v20 = vcombine.high %v236_v17, %v264_v18  ;;  %v1048_v21 = vld [vmem:[#allocation2 + $0x118] sm:$0xff]  }
  0x2a   :  { %926 = vmatprep.subr.bf16.mxu0 %v1021_v27  ;;  %622 = vmatprep.mubr.bf16.mxu0 %v283_v4  ;;  %v1054_v27 = vld [vmem:[#allocation2 + $0x130] sm:$0xff]  }
  0x2b   :  { %947 = vmatpush3.bf16.msra.mxu1 %v1020_v23  ;;  %663 = vmatprep.mubr.bf16.mxu1 %v284_v6  ;;  %v1050_v23 = vld [vmem:[#allocation2 + $0x120] sm:$0xff]  }
  0x2c   :  { %948 = vmatprep.subr.bf16.mxu1 %v1023_v29  ;;  %v1056_v29 = vld [vmem:[#allocation2 + $0x138] sm:$0xff]  }
  0x2d   :  { %927 = vmatpush3.bf16.msra.mxu0 %v1022_v28  ;;  %v1055_v28 = vld [vmem:[#allocation2 + $0x178] sm:$0xff]  }
  0x2e   :  { %928 = vmatprep.subr.bf16.mxu0 %v1025_v33  ;;  %v858_v33 = vld [vmem:[%s1220_s2] ss:$0 sm:$0xff] }
  0x2f   :  { %949 = vmatpush3.bf16.msra.mxu1 %v1024_v30  ;;  %v281_v30 = vcombine.low %v236_v17, %v264_v18 }
  0x30   :  { %950 = vmatprep.subr.bf16.mxu1 %v1027_v35 }
  0x31   :  { %929 = vmatpush3.bf16.msra.mxu0 %v1026_v34 }
  0x32   :  { %958 = vmatprep.subr.bf16.mxu0 %v1041_v44 }
  0x33   :  { %951 = vmatpush3.bf16.msra.mxu1 %v1040_v40 }
  0x34   :  { %982 = vmatprep.subr.bf16.mxu1 %v1118_v51  ;;  %623 = vmatmul.mubr.bf16.vlgmr.msra.gmra.mrb[0].mxu0 %v279_v5 }
  0x35   :  { %959 = vmatpush3.bf16.msra.mxu0 %v1042_v7  ;;  %704 = vmatprep.mubr.bf16.mxu0 %v285_v10 }
  0x36   :  { %664 = vmatmul.mubr.bf16.vlgmr.msra.gmra.mrb[0].mxu1 %v280_v8  ;;  %960 = vmatprep.subr.bf16.mxu0 %v1043_v9 }
  0x37   :  { %984 = vmatprep.mubr.msk.bf16.mxu1 %vm1119_vm0, %v1118_v51  ;;  %983 = vmatpush3.bf16.msra.mxu1 %v1057_v19 }
  0x39   :  { %961 = vmatpush3.bf16.msra.mxu0 %v1044_v11 }
  0x3a   :  { %962 = vmatprep.subr.bf16.mxu0 %v1045_v12 }
  0x3d   :  { %963 = vmatpush3.bf16.msra.mxu0 %v1046_v15 }
  0x3e   :  { %964 = vmatprep.subr.bf16.mxu0 %v1047_v16  ;;  %985 = vmatmul.mubr.msk.bf16.vlgmr.msra.gmra.mrb[4].mxu1 %vm586_vm1, %v282_v20 }
  0x41   :  { %965 = vmatpush3.bf16.msra.mxu0 %v1048_v21 }
  0x42   :  { %966 = vmatprep.subr.bf16.mxu0 %v1049_v22 }
  0x45   :  { %967 = vmatpush3.bf16.msra.mxu0 %v1050_v23 }
  0x46   :  { %968 = vmatprep.subr.bf16.mxu0 %v1051_v24 }
  0x49   :  { %969 = vmatpush3.bf16.msra.mxu0 %v1052_v25 }
  0x4a   :  { %970 = vmatprep.subr.bf16.mxu0 %v1053_v26 }
  0x4d   :  { %971 = vmatpush3.bf16.msra.mxu0 %v1054_v27 }
  0x4e   :  { %972 = vmatprep.subr.bf16.mxu0 %v1055_v28 }
  0x51   :  { %973 = vmatpush3.bf16.msra.mxu0 %v1056_v29 }
  0x54   :  { %705 = vmatmul.mubr.bf16.vlgmr.msra.gmra.mrb[4].mxu0 %v281_v30 }
 0x107   :  { %v930_v31 = vpop.f32.mrb[0].mxu0 }
 0x108   :  { %v931_v34 = vpop.f32.mrb[1].mxu0 }
 0x109   :  { %v952_v32 = vpop.f32.mrb[0].mxu1  ;;  %v932_v37 = vadd.f32 %v931_v34, %v930_v31  ;;  %v933_v38 = vpop.f32.mrb[2].mxu0 }
 0x10a   :  { %v953_v35 = vpop.f32.mrb[1].mxu1  ;;  %v934_v41 = vpop.f32.mrb[3].mxu0 }
 0x10b   :  { %v954_v39 = vadd.f32 %v953_v35, %v952_v32  ;;  %v955_v40 = vpop.f32.mrb[2].mxu1  ;;  %v625_v43 = vadd.f32 %v932_v37, %v858_v33  ;;  %v935_v44 = vadd.f32 %v934_v41, %v933_v38 }
 0x10c   :  { %v956_v42 = vpop.f32.mrb[3].mxu1 }
 0x10d   :  { %v957_v45 = vadd.f32 %v956_v42, %v955_v40  ;;  %v628_v46 = vadd.f32 %v935_v44, %v858_v33  ;;  %v666_v47 = vadd.f32 %v954_v39, %v625_v43 }
 0x10f   :  { %v669_v48 = vadd.f32 %v957_v45, %v628_v46 }
 0x111   :  { %v747_v49 = vpop.f32.mrb[4].mxu1 }
 0x112   :  { %v986_v50 = vpop.f32.mrb[5].mxu1 }
 0x113   :  { %v750_v51 = vpop.f32.mrb[6].mxu1 }
 0x114   :  { %v987_v52 = vpop.f32.mrb[7].mxu1 }
 0x127   :  { %v974_v53 = vpop.f32.mrb[4].mxu0 }
 0x128   :  { %v975_v54 = vpop.f32.mrb[5].mxu0 }
 0x129   :  { %v976_v55 = vadd.f32 %v975_v54, %v974_v53  ;;  %v977_v56 = vpop.f32.mrb[6].mxu0 }
 0x12a   :  { %v978_v57 = vpop.f32.mrb[7].mxu0 }
 0x12b   :  { %v707_v58 = vadd.f32 %v976_v55, %v666_v47  ;;  %v979_v59 = vadd.f32 %v978_v57, %v977_v56 }
 0x12d   :  { %v748_v60 = vadd.f32 %v747_v49, %v707_v58  ;;  %v710_v61 = vadd.f32 %v979_v59, %v669_v48 }
 0x12f   :  { %v751_v62 = vadd.f32 %v750_v51, %v710_v61  ;;  %754 = vmax.xlane.f32.xlu0 %v748_v60 }
 0x133   :  { %756 = vmax.xlane.f32.xlu0 %v751_v62 }
 0x1bc   :  { %v755_v63 = vpop.xlane.xlu0 %754 }
 0x1bd   :  { %v758_v0 = vsub.f32 %v748_v60, %v755_v63 }
 0x1bf   :  { %v760_v1 = vmul.f32 1.442695, %v758_v0 }
 0x1c0   :  { %v757_v2 = vpop.xlane.xlu0 %756 }
 0x1c1   :  { %v759_v3 = vsub.f32 %v751_v62, %v757_v2  ;;  %1058 = vpow2.f32 %v760_v1 }
 0x1c3   :  { %v762_v4 = vmul.f32 1.442695, %v759_v3 }
 0x1c5   :  { %1060 = vpow2.f32 %v762_v4 }
 0x1cb   :  { %v1059_v5 = vpop.eup %1058 }
 0x1cc   :  { %764 = vadd.xlane.f32.xlu1 %v1059_v5 }
 0x1cf   :  { %v1061_v6 = vpop.eup %1060 }
 0x1d0   :  { %766 = vadd.xlane.f32.xlu1 %v1061_v6 }
 0x259   :  { %v765_v7 = vpop.xlane.xlu1 %764 }
 0x25a   :  { %1062 = vlog2.f32 %v765_v7 }
 0x25d   :  { %v767_v8 = vpop.xlane.xlu1 %766 }
 0x25e   :  { %1064 = vlog2.f32 %v767_v8 }
 0x264   :  { %v1063_v9 = vpop.eup %1062 }
 0x265   :  { %v769_v10 = vmul.f32 0.6931472, %v1063_v9 }
 0x267   :  { %v772_v13 = vsub.f32 %v758_v0, %v769_v10 }
 0x268   :  { %v1065_v11 = vpop.eup %1064 }
 0x269   :  { %v771_v12 = vmul.f32 0.6931472, %v1065_v11 }
 0x26b   :  { %v773_v14 = vsub.f32 %v759_v3, %v771_v12 }
 0x26d   :  { %v774_v15 = vpack.c.bf16 %v773_v14, %v772_v13  ;;  %v909_v16 = vpack.c.bf16 %v773_v14, %v773_v14 }
 0x26f   :  { %v783_v17 = vrot.slane %v774_v15, %v1155_v36  ;;  %v790_v18 = vrot.slane %v909_v16, %v1155_v36 }
 0x271   :  { %v791_v19 = vcombine.high %v783_v17, %v783_v17  ;;  %v792_v20 = vcombine.high %v790_v18, %v790_v18  ;;  %v799_v21 = vrot.slane %v783_v17, %v1155_v36  ;;  %v806_v22 = vrot.slane %v790_v18, %v1155_v36  ;;  %910 = vst.sshfl [vmem:[#allocation5] sm:$0x1 pattern:$0x73625140] %v783_v17 }
 0x272   :  { %912 = vst.sshfl [vmem:[#allocation5 + $0x4] sm:$0x1 pattern:$0x73625140] %v790_v18 }
 0x273   :  { %v813_v23 = vrot.slane %v791_v19, %v1155_v36  ;;  %v820_v24 = vrot.slane %v792_v20, %v1155_v36  ;;  %v821_v25 = vcombine.high %v799_v21, %v799_v21  ;;  %v822_v26 = vcombine.high %v806_v22, %v806_v22  ;;  %911 = vst.sshfl [vmem:[#allocation5 + $0x1] sm:$0x1 pattern:$0x73625140] %v791_v19 }
 0x274   :  { %913 = vst.sshfl [vmem:[#allocation5 + $0x5] sm:$0x1 pattern:$0x73625140] %v792_v20 }
 0x275   :  { %v823_v27 = vcombine.high %v813_v23, %v813_v23  ;;  %v824_v28 = vcombine.high %v820_v24, %v820_v24  ;;  %835 = vst [vmem:[#allocation5 + $0x2] sm:$0x1] %v821_v25  ;;  %839 = vst [vmem:[#allocation5 + $0x6] sm:$0x1] %v822_v26 }
 0x277   :  { %836 = vst [vmem:[#allocation5 + $0x3] sm:$0x1] %v823_v27  ;;  %840 = vst [vmem:[#allocation5 + $0x7] sm:$0x1] %v824_v28 }
 0x278   :  { %845 = vsyncadd [#allocation4], 112  ;;  %s1120_s2 = smov [#allocation5]  }
 0x279   :  { %s846_s15 = sshll.u32 %s1120_s2, 4  ;;  %s847_s15 = int_to_ptr.vmem [resolvable:$true] %s846_s15 }
 0x27a   :  { %s1088_s16 = scalar_lea.vmem %s847_s15, 16  ;;  %s1092_s17 = scalar_lea.vmem %s847_s15, 128 }
 0x27b   :  { %p1089_p8 = scmp.ne.s32.totalorder %s847_s15, %s1088_s16  ;;  %p1093_p9 = scmp.lt.s32.totalorder %s847_s15, %s847_s15 }
 0x27c   :  { %p1094_p10 = scmp.lt.s32.totalorder %s1092_s17, %s1088_s16 }
 0x27e   :  { %p1095_p11 = por %p1094_p10, %p1093_p9 }
 0x280   :  { %p1096_p12 = pnand %p1095_p11, %p1089_p8 }
 0x282   :  { %1099 = shalt.err (!%p1096_p12)
}
 0x283   :  { %s1100_s20 = scalar_lea.hbm %s1221_s3, 16 }
 0x284   :  { %p1101_p13 = scmp.ne.s32.totalorder %s1221_s3, %s1100_s20  ;;  %p1104_p0 = scmp.lt.u32.totalorder %s1100_s20, %s1221_s3 }
 0x286   :  { %p1106_p1 = pnand %p1104_p0, %p1101_p13 }
 0x288   :  { %1109 = shalt.err (!%p1106_p1)
}
 0x289   :  { %s1121_s25 = smov 16   ;;  %s1122_s1 = smov 1  }
 0x28a   :  { %852 = dma.vmem_to_hbm [thread:$0]  %s847_s15, 16, %s1221_s3, [#allocation4], %s1121_s25, %s1121_s25, %s1122_s1  }
 0x28b   :  { %1112 = dma.done.wait [#allocation4], 128  }
 0x28c   :  { %1113 = vsyncadd [#allocation4], 4294967168 }
 0x28d   :  { %856 = vsyncpa [#allocation3], 1 }
 0x28e   :  { %857 = vsyncpa [#allocation4], 1 }

</bundles_post_ra>
